<compile_context>
chip_gen: v7x
topology: tpu7x:2x2x1
jax: 0.10.0
libtpu: 0.0.40
codegen_flags: <defaults>
</compile_context>

<pallas_src>
from math import sqrt

import jax
import jax.numpy as jnp
from jax import lax
from jax.experimental import pallas as pl
from jax.experimental.pallas import tpu as pltpu


def _round_up(x: int, m: int) -> int:
    return ((x + m - 1) // m) * m


def _choose_batch_tile(batch: int, n_p: int, requested) -> int:
    """Fill ~256 MXU rows per step, but keep >=2 grid steps for v7x's 2 TCs."""
    if requested is not None:
        bt = max(1, min(int(requested), batch))
    else:
        bt = max(1, min(batch, max(1, 256 // n_p)))
    # Ensure at least 2 parallel grid steps whenever batch permits.
    while bt > 1 and -(-batch // bt) < 2:
        bt = max(1, bt // 2)
    return bt


def _make_attention_kernel(n_valid: int, dk_pad: int, dv_pad: int):
    def kernel(x_ref, w_ref, o_ref):
        b_tile, n_p, dq = x_ref.shape

        # Fold batch into rows: one lane-dense projection matmul on the MXU.
        # (contraction K = true dim_q; Mosaic pads the 6-wide lanes in-register)
        x2d = x_ref[...].reshape(b_tile * n_p, dq)          # (B*n, dq)
        qkv = jnp.dot(x2d, w_ref[...],
                      preferred_element_type=jnp.float32)   # (B*n, 2*DK + DV)

        # Lane-aligned slices (offsets are multiples of 128) -> free.
        # norm_fact is already folded into the wq slab of w_fused.
        q = qkv[:, :dk_pad].reshape(b_tile, n_p, dk_pad)
        k = qkv[:, dk_pad:2 * dk_pad].reshape(b_tile, n_p, dk_pad)
        v = qkv[:, 2 * dk_pad:].reshape(b_tile, n_p, dv_pad)

        # Scores: contract the feature axis of q and k directly (no k transpose).
        scores = lax.dot_general(
            q, k,
            dimension_numbers=(((2,), (2,)), ((0,), (0,))),
            preferred_element_type=jnp.float32,
        )                                                    # (B, n_p, n_p)

        if n_valid < n_p:
            # Mask padded key positions (large finite negative avoids inf-inf NaNs).
            kv_idx = lax.broadcasted_iota(jnp.int32, scores.shape, 2)
            scores = jnp.where(kv_idx < n_valid, scores, jnp.float32(-1e30))

        # Numerically stable softmax; divide via EUP approx reciprocal.
        m = jnp.max(scores, axis=-1, keepdims=True)
        p = jnp.exp(scores - m)
        denom = jnp.sum(p, axis=-1, keepdims=True)
        inv = pl.reciprocal(denom, approx=True)

        if n_p <= dv_pad:
            # Normalize p (B,n,n) before P@V: fewer VPU multiplies than scaling att.
            p = p * inv
            att = lax.dot_general(
                p.astype(v.dtype), v,
                dimension_numbers=(((2,), (1,)), ((0,), (0,))),
                preferred_element_type=jnp.float32,
            )
        else:
            att = lax.dot_general(
                p.astype(v.dtype), v,
                dimension_numbers=(((2,), (1,)), ((0,), (0,))),
                preferred_element_type=jnp.float32,
            )
            att = att * inv

        o_ref[...] = att.astype(o_ref.dtype)

    return kernel


def _self_attention_fused(x, w_fused, dim_v: int, dk_p: int, dv_p: int,
                          *, batch_tile=None, compute_dtype=None):
    batch, n, dim_q = x.shape
    out_dtype = x.dtype

    n_p = _round_up(n, 8)
    b_tile = _choose_batch_tile(batch, n_p, batch_tile)
    batch_p = _round_up(batch, b_tile)

    in_dtype = compute_dtype if compute_dtype is not None else x.dtype
    if (batch_p, n_p) != (batch, n) or in_dtype != x.dtype:
        # Only batch / sequence get zero-padded; the feature dim stays at dim_q.
        x_p = jnp.zeros((batch_p, n_p, dim_q), dtype=in_dtype)
        x_p = x_p.at[:batch, :n, :].set(x.astype(in_dtype))
    else:
        x_p = x

    w_cols = w_fused.shape[1]
    kernel = _make_attention_kernel(n, dk_p, dv_p)

    out_p = pl.pallas_call(
        kernel,
        out_shape=jax.ShapeDtypeStruct((batch_p, n_p, dv_p), out_dtype),
        grid_spec=pltpu.PrefetchScalarGridSpec(
            num_scalar_prefetch=0,
            grid=(batch_p // b_tile,),
            in_specs=[
                pl.BlockSpec((b_tile, n_p, dim_q), lambda b: (b, 0, 0)),
                pl.BlockSpec((dim_q, w_cols), lambda b: (0, 0)),
            ],
            out_specs=pl.BlockSpec((b_tile, n_p, dv_p), lambda b: (b, 0, 0)),
        ),
        compiler_params=pltpu.CompilerParams(
            dimension_semantics=("parallel",),
        ),
    )(x_p, w_fused)

    return out_p[:batch, :n, :dim_v]


def _fuse_weights(wq, wk, wv, dim_k: int, dtype):
    """Pre-transpose + fuse + pad wq/wk/wv into one [dim_q, 2*dk_p + dv_p] matrix.

    norm_fact (1/sqrt(dim_k)) is folded into the wq slab so the kernel never
    rescales q. Only the output dim is padded to lane multiples; the contraction
    dim stays at the true dim_q.
    """
    dim_kk, dim_q = wq.shape
    dim_v = wv.shape[0]
    dk_p = _round_up(dim_kk, 128)
    dv_p = _round_up(dim_v, 128)
    norm_fact = 1.0 / sqrt(dim_k)

    w_fused = jnp.zeros((dim_q, 2 * dk_p + dv_p), dtype=dtype)
    w_fused = w_fused.at[:, 0:dim_kk].set((wq * norm_fact).T.astype(dtype))
    w_fused = w_fused.at[:, dk_p:dk_p + dim_kk].set(wk.T.astype(dtype))
    w_fused = w_fused.at[:, 2 * dk_p:2 * dk_p + dim_v].set(wv.T.astype(dtype))
    return w_fused, dim_v, dk_p, dv_p


def make_self_attention(wq, wk, wv, dim_k: int, *, batch_tile=None, compute_dtype=None):
    """Hoisted weight fusion: returns a jitted callable x -> attention(x).

    compute_dtype=jnp.bfloat16 halves x/w HBM+VMEM traffic on v6e/v7x (MXU-native
    bf16); softmax math stays f32 inside the kernel either way.
    """
    w_dtype = compute_dtype if compute_dtype is not None else wq.dtype
    w_fused, dim_v, dk_p, dv_p = _fuse_weights(wq, wk, wv, dim_k, w_dtype)

    def fn(x):
        return _self_attention_fused(x, w_fused, dim_v, dk_p, dv_p,
                                     batch_tile=batch_tile,
                                     compute_dtype=compute_dtype)

    return jax.jit(fn)


def self_attention(x, wq, wk, wv, dim_k: int, *, batch_tile=None, compute_dtype=None):
    """One-shot convenience wrapper. x: [batch, n, dim_q]; wq/wk: [dim_k, dim_q];
    wv: [dim_v, dim_q] (PyTorch nn.Linear layout)."""
    w_dtype = compute_dtype if compute_dtype is not None else wq.dtype
    w_fused, dim_v, dk_p, dv_p = _fuse_weights(wq, wk, wv, dim_k, w_dtype)
    return _self_attention_fused(x, w_fused, dim_v, dk_p, dv_p,
                                 batch_tile=batch_tile,
                                 compute_dtype=compute_dtype)


def self_attention_ref(x, wq, wk, wv, dim_k: int):
    """Pure-JAX reference matching the PyTorch forward exactly."""
    norm_fact = 1.0 / sqrt(dim_k)
    q = jnp.einsum("bnd,kd->bnk", x, wq)
    k = jnp.einsum("bnd,kd->bnk", x, wk)
    v = jnp.einsum("bnd,vd->bnv", x, wv)
    dist = jnp.einsum("bik,bjk->bij", q, k) * norm_fact
    dist = jax.nn.softmax(dist, axis=-1)
    return jnp.einsum("bij,bjv->biv", dist, v)


if __name__ == "__main__":
    # SelfAttention(6, 10, 6)
    dim_q, dim_k, dim_v = 6, 10, 6
    batch, n = 2, 8

    key = jax.random.PRNGKey(0)
    kx, kq, kk, kv = jax.random.split(key, 4)

    x = jax.random.normal(kx, (batch, n, dim_q), dtype=jnp.float32)

    # Deterministic parameter init mimicking nn.Linear (uniform in +-1/sqrt(fan_in)).
    bound = 1.0 / sqrt(dim_q)
    wq = jax.random.uniform(kq, (dim_k, dim_q), jnp.float32, -bound, bound)
    wk = jax.random.uniform(kk, (dim_k, dim_q), jnp.float32, -bound, bound)
    wv = jax.random.uniform(kv, (dim_v, dim_q), jnp.float32, -bound, bound)

    # Weight fusion hoisted out of the per-call path.
    attn = make_self_attention(wq, wk, wv, dim_k)
    out = jax.block_until_ready(attn(x))

    ref = self_attention_ref(x, wq, wk, wv, dim_k)
    assert out.shape == (batch, n, dim_v)
    # Tolerance accounts for the EUP approx reciprocal in the softmax denominator.
    assert jnp.allclose(out, ref, atol=3e-3, rtol=3e-3), "mismatch vs reference"

    print("KERNEL_OK")
</pallas_src>

<mosaic_0001>
module attributes {stable_mosaic.version = 11 : i64} {
  func.func @kernel(%arg0: i32, %arg1: memref<1x8x6xf32, #tpu.memory_space<vmem>>, %arg2: memref<6x384xf32, #tpu.memory_space<vmem>>, %arg3: memref<1x8x128xf32, #tpu.memory_space<vmem>>) attributes {dimension_semantics = [#tpu.dimension_semantics<parallel>], iteration_bounds = array<i64: 2>, scalar_prefetch = 0 : i64, scratch_operands = 0 : i64, tpu.core_type = #tpu.core_type<tc>, window_params = [{transform_indices = @transform_0, window_bounds = array<i64: 1, 8, 6>}, {pipeline_mode = #tpu.pipeline_mode<synchronous>, transform_indices = @transform_1, window_bounds = array<i64: 6, 384>}, {transform_indices = @transform_2, window_bounds = array<i64: 1, 8, 128>}]} {
    %c0 = arith.constant 0 : index
    %c0_0 = arith.constant 0 : index
    %c0_1 = arith.constant 0 : index
    %0 = vector.load %arg1[%c0, %c0_0, %c0_1] : memref<1x8x6xf32, #tpu.memory_space<vmem>>, vector<1x8x6xf32>
    %1 = vector.shape_cast %0 : vector<1x8x6xf32> to vector<8x6xf32>
    %c0_2 = arith.constant 0 : index
    %c0_3 = arith.constant 0 : index
    %2 = vector.load %arg2[%c0_2, %c0_3] : memref<6x384xf32, #tpu.memory_space<vmem>>, vector<6x384xf32>
    %cst = arith.constant dense<0.000000e+00> : vector<8x384xf32>
    %3 = tpu.matmul %1, %2, %cst {dimension_numbers = #tpu.dot_dimension_numbers<[1], [0], [0], [1], [0, 0, 1, 1], [], []>} : vector<8x6xf32>, vector<6x384xf32>, vector<8x384xf32> -> vector<8x384xf32>
    %4 = vector.extract_strided_slice %3 {offsets = [0, 0], sizes = [8, 128], strides = [1, 1]} : vector<8x384xf32> to vector<8x128xf32>
    %5 = vector.shape_cast %4 : vector<8x128xf32> to vector<1x8x128xf32>
    %6 = vector.extract_strided_slice %3 {offsets = [0, 128], sizes = [8, 128], strides = [1, 1]} : vector<8x384xf32> to vector<8x128xf32>
    %7 = vector.shape_cast %6 : vector<8x128xf32> to vector<1x8x128xf32>
    %8 = vector.extract_strided_slice %3 {offsets = [0, 256], sizes = [8, 128], strides = [1, 1]} : vector<8x384xf32> to vector<8x128xf32>
    %9 = vector.shape_cast %8 : vector<8x128xf32> to vector<1x8x128xf32>
    %cst_4 = arith.constant dense<0.000000e+00> : vector<1x8x8xf32>
    %10 = tpu.matmul %5, %7, %cst_4 {dimension_numbers = #tpu.dot_dimension_numbers<[2], [2], [1], [1], [0, 0, 0, 1, 1, 1], [0], [0]>} : vector<1x8x128xf32>, vector<1x8x128xf32>, vector<1x8x8xf32> -> vector<1x8x8xf32>
    %cst_5 = arith.constant dense<0xFF800000> : vector<1x8xf32>
    %11 = vector.multi_reduction <maximumf>, %10, %cst_5 [2] : vector<1x8x8xf32> to vector<1x8xf32>
    %12 = vector.shape_cast %11 : vector<1x8xf32> to vector<1x8x1xf32>
    %13 = vector.broadcast %12 : vector<1x8x1xf32> to vector<1x8x8xf32>
    %14 = arith.subf %10, %13 : vector<1x8x8xf32>
    %15 = math.exp %14 : vector<1x8x8xf32>
    %cst_6 = arith.constant dense<0.000000e+00> : vector<1x8xf32>
    %16 = vector.multi_reduction <add>, %15, %cst_6 [2] : vector<1x8x8xf32> to vector<1x8xf32>
    %17 = vector.shape_cast %16 : vector<1x8xf32> to vector<1x8x1xf32>
    %18 = tpu.reciprocal %17 {approx = true} : vector<1x8x1xf32> -> vector<1x8x1xf32>
    %19 = vector.broadcast %18 : vector<1x8x1xf32> to vector<1x8x8xf32>
    %20 = arith.mulf %15, %19 : vector<1x8x8xf32>
    %cst_7 = arith.constant dense<0.000000e+00> : vector<1x8x128xf32>
    %21 = tpu.matmul %20, %9, %cst_7 {dimension_numbers = #tpu.dot_dimension_numbers<[2], [1], [1], [2], [0, 0, 0, 1, 1, 2], [0], [0]>} : vector<1x8x8xf32>, vector<1x8x128xf32>, vector<1x8x128xf32> -> vector<1x8x128xf32>
    %c0_8 = arith.constant 0 : index
    %c0_9 = arith.constant 0 : index
    %c0_10 = arith.constant 0 : index
    %22 = vector.load %arg3[%c0_8, %c0_9, %c0_10] : memref<1x8x128xf32, #tpu.memory_space<vmem>>, vector<1x8x128xf32>
    tpu.vector_store %arg3[%c0_8, %c0_9, %c0_10], %21 {strides = array<i32>} : memref<1x8x128xf32, #tpu.memory_space<vmem>>, vector<1x8x128xf32>,
    return
  }
  func.func @transform_0(%arg0: i32) -> (i32, i32, i32) {
    %c0_i32 = arith.constant 0 : i32
    %c0_i32_0 = arith.constant 0 : i32
    %c0_i32_1 = arith.constant 0 : i32
    return %arg0, %c0_i32, %c0_i32_0 : i32, i32, i32
  }
  func.func @transform_1(%arg0: i32) -> (i32, i32) {
    %c0_i32 = arith.constant 0 : i32
    %c0_i32_0 = arith.constant 0 : i32
    %c0_i32_1 = arith.constant 0 : i32
    return %c0_i32, %c0_i32_0 : i32, i32
  }
  func.func @transform_2(%arg0: i32) -> (i32, i32, i32) {
    %c0_i32 = arith.constant 0 : i32
    %c0_i32_0 = arith.constant 0 : i32
    %c0_i32_1 = arith.constant 0 : i32
    return %arg0, %c0_i32, %c0_i32_0 : i32, i32, i32
  }
}

</mosaic_0001>

<bundles_post_ra>
// kernel: fn.1
= control target key start
LH: loop header
LB: loop body
LE: loop exit
PB: predicated region body
PF: predicated region fallthrough
CT: control target
= control target key end

     0   :  { %s582_s9 = smov 0   ;;  %s621_s0 = inlined_call_operand.vmem [shape: f32[2,8,6], index: 0, kind: input, shape index: {}]   ;;  %s622_s1 = inlined_call_operand.vmem [shape: f32[6,384], index: 1, kind: input, shape index: {}]   ;;  %s623_s2 = inlined_call_operand.vmem [shape: f32[2,8,128], index: 2, kind: output, shape index: {}]  }
   0x1 LB: > { %s507_s10 = sadd.s32 4294967295, %s563_s9   ;;  %p511_p0 = scmp.ge.s32.totalorder %s563_s9, 1  ;;  %s563_s9 = sphi %s582_s9, %s12_s9  }
   0x2   : > { %p111_p1 = scmp.lt.s32.totalorder %s563_s9, 3 }
   0x4   : > { %p112_p2 = pnand %p511_p0, %p111_p1 }
   0x5   : > { %v141_v0 = vld [vmem:[%s622_s1 + $0x8] sm:$0x3f] (!%p112_p2)  ;;  %vm147_vm0 = vcmask (!%p112_p2), 1045504   ;;  %v140_v1 = vld [vmem:[%s622_s1] sm:$0x3f] (!%p112_p2)  ;;  %v565_v2 = vmov (!%p112_p2), 0.0  }
   0x6   : > { %115 = sbr.rel (%p112_p2) target bundleno = 972 (0x3cc), region = 28  ;;  %514 = vmatprep.subr.msk.mxu0 (!%p112_p2), %vm147_vm0, %v141_v0  ;;  %221 = vmatprep.mubr.f32.mxu0 (!%p112_p2), %v565_v2  ;;  %p131_p3 = scmp.lt.s32.totalorder (!%p112_p2), %s507_s10, 1  ;;  %vm143_vm1 = vcmask (!%p112_p2), 48128   ;;  %vm566_vm2 = vmmov (!%p112_p2), 0   ;;  %v142_v6 = vld [vmem:[%s622_s1 + $0x10] sm:$0x3f] (!%p112_p2) }
   0x7   : > { %515 = vmatpush1.msk.msra.mxu0 (!%p112_p2), %vm147_vm0, %v140_v1  ;;  %528 = vmatprep.subr.mxu1 (!%p112_p2), %v565_v2  ;;  %vm368_vm3 = vcmask (!%p112_p2), 64512  }
   0x8   : > { %533 = vmatprep.subr.mxu0 (!%p112_p2), %v565_v2  ;;  %530 = vmatprep.mubr.msk.f32.mxu1 (!%p112_p2), %vm566_vm2, %v565_v2 }
   0x9   : > { %529 = vmatpush3.msk.msra.mxu1 (!%p112_p2), %vm147_vm0, %v142_v6 }
   0xa   : > { %538 = vmatprep.subr.mxu1 (!%p112_p2), %v565_v2 }
   0xd   : > { %s625_s10 = smov (!%p131_p3, %s507_s10), 1 }
   0xe   : > { %s512_s15 = sshll.u32 %s625_s10, 3 }
   0xf   : > { %s134_s18 = scalar_lea.vmem %s621_s0, %s512_s15  ;;  %s138_s23 = scalar_lea.vmem %s623_s2, %s512_s15 }
  0x10   : > { %v139_v3 = vld [vmem:[%s134_s18] sm:$0xff] }
  0x11   : > { %516 = vmatmul.mubr.msk.f32.vlgmr.msra.gmra.mrb[0].mxu0 %vm143_vm1, %v139_v3  ;;  %531 = vmatmul.mubr.msk.f32.vlgmr.msra.gmra.mrb[0].mxu1 %vm143_vm1, %v139_v3 }
  0x12   : > { %535 = vmatprep.mubr.msk.f32.mxu0 %vm566_vm2, %v565_v2  ;;  %540 = vmatprep.mubr.msk.f32.mxu1 %vm566_vm2, %v565_v2 }
  0xe4   : > { %v223_v4 = vpop.f32.mrb[0].mxu0  ;;  %v294_v15 = vpop.f32.mrb[0].mxu1 }
  0xe5   : > { %v225_v5 = vpop.f32.mrb[1].mxu0  ;;  %v532_v16 = vpop.f32.mrb[1].mxu1  ;;  %539 = vmatpush3.msra.mxu1 %v294_v15 }
  0xe6   : > { %534 = vmatpush3.xpose.msra.mxu0 %v225_v5 }
  0xe9   : > { %536 = vmatmul.mubr.f32.vlgmr.msra.gmra.mrb[2].mxu0 %v223_v4 }
 0x1bc   : > { %v364_v7 = vpop.f32.mrb[2].mxu0 }
 0x1bd   : > { %v537_v8 = vpop.f32.mrb[3].mxu0  ;;  %v369_v9 = vsel %vm368_vm3, %v364_v7, -inf }
 0x1be   : > { %370 = vmax.xlane.f32.xlu0 %v369_v9 }
 0x24b   : > { %v371_v10 = vpop.xlane.xlu0 %370 }
 0x24c   : > { %v372_v11 = vsub.f32 %v364_v7, %v371_v10 }
 0x24e   : > { %v373_v12 = vmul.f32 1.442695, %v372_v11 }
 0x250   : > { %553 = vpow2.f32 %v373_v12 }
 0x25a   : > { %v554_v13 = vpop.eup %553 }
 0x25b   : > { %v375_v14 = vsel %vm368_vm3, %v554_v13, 0.0 }
 0x25c   : > { %376 = vadd.xlane.f32.xlu0 %v375_v14 }
 0x2e9   : > { %v377_v17 = vpop.xlane.xlu0 %376 }
 0x2ea   : > { %555 = vrcp.f32 %v377_v17 }
 0x2f4   : > { %v556_v18 = vpop.eup %555 }
 0x2f5   : > { %v379_v19 = vmul.f32 %v556_v18, %v554_v13 }
 0x2f7   : > { %541 = vmatmul.mubr.msk.f32.vlgmr.msra.gmra.mrb[2].mxu1 %vm368_vm3, %v379_v19 }
 0x3ca   : > { %v449_v20 = vpop.f32.mrb[2].mxu1 }
 0x3cb   : > { %453 = vst [vmem:[%s138_s23] sm:$0xff] %v449_v20  ;;  %v542_v21 = vpop.f32.mrb[3].mxu1 }
 0x3cc PF: > { %s12_s9 = sadd.s32 1, %s563_s9  }
 0x3cd   : > { %p9_p4 = scmp.ge.s32.totalorder %s12_s9, 4  }
 0x3cf   :  { %11 = sbr.rel (!%p9_p4) target bundleno = 1 (0x1), region = 58 }

</bundles_post_ra>
